<compile_context>
chip_gen: v7x
topology: tpu7x:2x2x1
jax: 0.10.0
libtpu: 0.0.40
codegen_flags: <defaults>
</compile_context>

<pallas_src>
import functools

import jax
import jax.numpy as jnp
from jax.experimental import pallas as pl
from jax.experimental.pallas import tpu as pltpu


_EPS = 1e-5
_VMEM_LIMIT = 48 * 1024 * 1024   # < 64 MiB (v7x physical), > 16/32 MiB scoped defaults


def _round_up(v, m):
    return -(-v // m) * m


# ------------------------------ Pallas kernels ------------------------------ #

def _conv_stats_kernel(p_ref, w_ref, conv_ref, s1_ref, s2_ref):
    """One (parity, M-tile) step: bf16 GEMM tile (f32 acc) + BN partial sums."""
    acc = jnp.dot(p_ref[0], w_ref[0], preferred_element_type=jnp.float32)
    conv_ref[0] = acc
    s1_ref[0, 0] = jnp.sum(acc, axis=0, keepdims=True)
    s2_ref[0, 0] = jnp.sum(acc * acc, axis=0, keepdims=True)


def _bn_act_kernel(conv_ref, scale_ref, shift_ref, o_ref, *, neg_slope):
    """Apply precomputed BN scale/shift + (Leaky)ReLU to one tile."""
    y = conv_ref[0] * scale_ref[...] + shift_ref[...]
    o_ref[0] = jnp.where(y > 0, y, neg_slope * y)


# --------------------------- GEMM + BN + activation -------------------------- #

def _gemm_bn_act(patches, wmat, gamma, beta, act):
    """patches: [P, M, K] f32, wmat: [P, K, Cout] f32 -> [P, M, Cout] f32."""
    P, M, K = patches.shape
    Cout = wmat.shape[2]
    count = P * M                         # BN sample count per channel (= N*Ho*Wo)

    Cpad = _round_up(Cout, 128)           # lane-dense outputs / weights
    Kp = _round_up(K, 128)                # aligned contraction dim
    TM = 512                              # rows per grid step (fits budget w/ dbl-buf)
    if M < TM:
        TM = _round_up(M, 16)
    Mp = _round_up(M, TM)
    n_mt = Mp // TM

    # Zero padding is inert: padded rows/cols contribute 0 to the GEMM and to the
    # BN sums (count uses the true M); padded output rows/channels are sliced off.
    patches = jnp.pad(patches, ((0, 0), (0, Mp - M), (0, Kp - K))).astype(jnp.bfloat16)
    wmat = jnp.pad(wmat, ((0, 0), (0, Kp - K), (0, Cpad - Cout))).astype(jnp.bfloat16)

    cparams = pltpu.CompilerParams(
        dimension_semantics=("parallel", "parallel"),
        vmem_limit_bytes=_VMEM_LIMIT,
    )

    # Pass 1: tiled GEMM + per-tile BN partial sums (fully parallel grid; the
    # weight block index only changes with the slow grid axis, so it is reused
    # across all M-tiles of a parity).
    conv, s1, s2 = pl.pallas_call(
        _conv_stats_kernel,
        out_shape=(
            jax.ShapeDtypeStruct((P, Mp, Cpad), jnp.float32),
            jax.ShapeDtypeStruct((P, n_mt, 1, Cpad), jnp.float32),
            jax.ShapeDtypeStruct((P, n_mt, 1, Cpad), jnp.float32),
        ),
        grid=(P, n_mt),
        in_specs=[
            pl.BlockSpec((1, TM, Kp), lambda p, m: (p, m, 0)),
            pl.BlockSpec((1, Kp, Cpad), lambda p, m: (p, 0, 0)),
        ],
        out_specs=(
            pl.BlockSpec((1, TM, Cpad), lambda p, m: (p, m, 0)),
            pl.BlockSpec((1, 1, 1, Cpad), lambda p, m: (p, m, 0, 0)),
            pl.BlockSpec((1, 1, 1, Cpad), lambda p, m: (p, m, 0, 0)),
        ),
        compiler_params=cparams,
    )(patches, wmat)

    # Tiny cross-tile reduction + BN coefficients (plain XLA on [Cpad] vectors).
    tot1 = jnp.sum(s1, axis=(0, 1, 2))
    tot2 = jnp.sum(s2, axis=(0, 1, 2))
    mean = tot1 / count
    var = jnp.maximum(tot2 / count - mean * mean, 0.0)   # biased (training-mode BN)
    gpad = jnp.pad(gamma.astype(jnp.float32), (0, Cpad - Cout))
    bpad = jnp.pad(beta.astype(jnp.float32), (0, Cpad - Cout))
    scale = gpad * jax.lax.rsqrt(var + _EPS)
    shift = bpad - mean * scale

    # Pass 2: normalize + activation (one FMA + select per element).
    neg_slope = 0.0 if act == "relu" else 0.2
    out = pl.pallas_call(
        functools.partial(_bn_act_kernel, neg_slope=neg_slope),
        out_shape=jax.ShapeDtypeStruct((P, Mp, Cpad), jnp.float32),
        grid=(P, n_mt),
        in_specs=[
            pl.BlockSpec((1, TM, Cpad), lambda p, m: (p, m, 0)),
            pl.BlockSpec((1, Cpad), lambda p, m: (0, 0)),
            pl.BlockSpec((1, Cpad), lambda p, m: (0, 0)),
        ],
        out_specs=pl.BlockSpec((1, TM, Cpad), lambda p, m: (p, m, 0)),
        compiler_params=cparams,
    )(conv, scale.reshape(1, Cpad), shift.reshape(1, Cpad))

    return out[:, :M, :Cout]


# ------------------------------ host-side glue ------------------------------ #

def _im2col(xp, Ho, Wo, kh, kw, stride):
    """xp: [N, Cin, Hp, Wp] -> [N*Ho*Wo, Cin*kh*kw], columns ordered (ci, ky, kx)."""
    N, Cin = xp.shape[0], xp.shape[1]
    cols = []
    for ky in range(kh):
        for kx in range(kw):
            cols.append(xp[:, :, ky:ky + stride * Ho:stride, kx:kx + stride * Wo:stride])
    p = jnp.stack(cols, axis=0).reshape(kh, kw, N, Cin, Ho, Wo)
    p = p.transpose(2, 4, 5, 3, 0, 1)          # [N, Ho, Wo, Cin, ky, kx]
    return p.reshape(N * Ho * Wo, Cin * kh * kw)


@functools.partial(jax.jit, static_argnames=("down", "act", "use_dropout"))
def block_forward(x, conv_w, bn_gamma, bn_beta, *, down=True, act="relu",
                  use_dropout=False):
    """Forward of Pix2Pix Block.  x: [N, Cin, H, W] float32 (NCHW, like PyTorch)."""
    N, Cin, H, W = x.shape
    if down:
        # Conv2d(Cin, Cout, 4, stride=2, padding=1, bias=False, padding_mode='reflect')
        Cout = conv_w.shape[0]                               # [Cout, Cin, 4, 4]
        Ho, Wo = H // 2, W // 2
        xp = jnp.pad(x, ((0, 0), (0, 0), (1, 1), (1, 1)), mode="reflect")
        patches = _im2col(xp, Ho, Wo, 4, 4, 2)[None]         # [1, N*Ho*Wo, Cin*16]
        wmat = conv_w.reshape(Cout, Cin * 16).T[None]        # [1, Cin*16, Cout]
        out = _gemm_bn_act(patches, wmat, bn_gamma, bn_beta, act)
        y = out[0].reshape(N, Ho, Wo, Cout).transpose(0, 3, 1, 2)
    else:
        # ConvTranspose2d(Cin, Cout, 4, stride=2, padding=1, bias=False) as 4 parity
        # sub-convolutions: out[2i+py, 2j+px] is a stride-1 2x2 conv of the input
        # with sub-kernel taps ky = 3-py-2*dy, kx = 3-px-2*dx.
        Cout = conv_w.shape[1]                               # [Cin, Cout, 4, 4]
        Ho, Wo = 2 * H, 2 * W
        xp = jnp.pad(x, ((0, 0), (0, 0), (1, 1), (1, 1)))    # zero pad
        p_all = _im2col(xp, H + 1, W + 1, 2, 2, 1).reshape(N, H + 1, W + 1, Cin * 4)
        patches = jnp.stack(
            [p_all[:, 0:H, 0:W],            # parity (0,0): window start (i,   j)
             p_all[:, 0:H, 1:W + 1],        # parity (0,1): window start (i,   j+1)
             p_all[:, 1:H + 1, 0:W],        # parity (1,0): window start (i+1, j)
             p_all[:, 1:H + 1, 1:W + 1]],   # parity (1,1): window start (i+1, j+1)
            axis=0).reshape(4, N * H * W, Cin * 4)
        w_par = []
        for py in range(2):
            for px in range(2):
                ky = [3 - py, 1 - py]                        # dy = 0, 1
                kx = [3 - px, 1 - px]                        # dx = 0, 1
                sub = conv_w[:, :, ky, :][:, :, :, kx]       # [Cin, Cout, 2, 2]
                w_par.append(sub.transpose(0, 2, 3, 1).reshape(Cin * 4, Cout))
        wmat = jnp.stack(w_par, axis=0)                      # [4, Cin*4, Cout]
        out = _gemm_bn_act(patches, wmat, bn_gamma, bn_beta, act)
        y = (out.reshape(2, 2, N, H, W, Cout)
                .transpose(2, 5, 3, 0, 4, 1)                 # [N, Cout, H, py, W, px]
                .reshape(N, Cout, Ho, Wo))

    if use_dropout:
        # TODO(synk): training-mode Dropout(0.5) (random mask + 2x scale) not
        # implemented; identity as in eval mode / when use_dropout=False.
        pass
    return y


# ---------------------------- pure-JAX reference ---------------------------- #

def _ref_block(x, conv_w, gamma, beta, *, down, act, eps=_EPS):
    if down:
        xp = jnp.pad(x, ((0, 0), (0, 0), (1, 1), (1, 1)), mode="reflect")
        conv = jax.lax.conv_general_dilated(
            xp, conv_w, window_strides=(2, 2), padding="VALID",
            dimension_numbers=("NCHW", "OIHW", "NCHW"))
    else:
        w_eff = jnp.flip(conv_w, axis=(2, 3)).transpose(1, 0, 2, 3)
        conv = jax.lax.conv_general_dilated(
            x, w_eff, window_strides=(1, 1), padding=((2, 2), (2, 2)),
            lhs_dilation=(2, 2), dimension_numbers=("NCHW", "OIHW", "NCHW"))
    mean = conv.mean(axis=(0, 2, 3), keepdims=True)
    var = ((conv - mean) ** 2).mean(axis=(0, 2, 3), keepdims=True)
    y = ((conv - mean) * jax.lax.rsqrt(var + eps) * gamma.reshape(1, -1, 1, 1)
         + beta.reshape(1, -1, 1, 1))
    ns = 0.0 if act == "relu" else 0.2
    return jnp.where(y > 0, y, ns * y)


if __name__ == "__main__":
    key = jax.random.PRNGKey(0)
    k1, k2, k3 = jax.random.split(key, 3)
    N, Cin, Cout, H, W = 2, 4, 8, 16, 16

    x = jax.random.normal(k1, (N, Cin, H, W), jnp.float32)

    # Down block: Conv2d weight [Cout, Cin, 4, 4]; BatchNorm2d init gamma=1, beta=0.
    w_down = jax.random.normal(k2, (Cout, Cin, 4, 4), jnp.float32) * 0.05
    gamma_d = jnp.ones((Cout,), jnp.float32)
    beta_d = jnp.zeros((Cout,), jnp.float32)
    y_down = block_forward(x, w_down, gamma_d, beta_d, down=True, act="relu")

    # Up block: ConvTranspose2d weight [Cin_t=Cout, Cout_t=Cin, 4, 4].
    w_up = jax.random.normal(k3, (Cout, Cin, 4, 4), jnp.float32) * 0.05
    gamma_u = jnp.ones((Cin,), jnp.float32)
    beta_u = jnp.zeros((Cin,), jnp.float32)
    y_up = block_forward(y_down, w_up, gamma_u, beta_u, down=False, act="leaky")

    jax.block_until_ready((y_down, y_up))
    assert y_down.shape == (N, Cout, H // 2, W // 2)
    assert y_up.shape == (N, Cin, H, W)

    # Correctness vs. pure-JAX (f32) reference; tolerance covers bf16 MXU operands.
    r_down = _ref_block(x, w_down, gamma_d, beta_d, down=True, act="relu")
    r_up = _ref_block(y_down, w_up, gamma_u, beta_u, down=False, act="leaky")
    ok_d = bool(jnp.allclose(y_down, r_down, atol=5e-2, rtol=5e-2))
    ok_u = bool(jnp.allclose(y_up, r_up, atol=5e-2, rtol=5e-2))
    assert ok_d, "down block mismatch vs reference"
    assert ok_u, "up block mismatch vs reference"
    print("KERNEL_OK")
</pallas_src>

<mosaic_0001>
module attributes {stable_mosaic.version = 11 : i64} {
  func.func @_bn_act_kernel(%arg0: i32, %arg1: i32, %arg2: memref<1x128x128xf32, #tpu.memory_space<vmem>>, %arg3: memref<1x128xf32, #tpu.memory_space<vmem>>, %arg4: memref<1x128xf32, #tpu.memory_space<vmem>>, %arg5: memref<1x128x128xf32, #tpu.memory_space<vmem>>) attributes {dimension_semantics = [#tpu.dimension_semantics<parallel>, #tpu.dimension_semantics<parallel>], iteration_bounds = array<i64: 1, 1>, scalar_prefetch = 0 : i64, scratch_operands = 0 : i64, tpu.core_type = #tpu.core_type<tc>, window_params = [{transform_indices = @transform_0, window_bounds = array<i64: 1, 128, 128>}, {pipeline_mode = #tpu.pipeline_mode<synchronous>, transform_indices = @transform_1, window_bounds = array<i64: 1, 128>}, {pipeline_mode = #tpu.pipeline_mode<synchronous>, transform_indices = @transform_2, window_bounds = array<i64: 1, 128>}, {transform_indices = @transform_3, window_bounds = array<i64: 1, 128, 128>}]} {
    %c0 = arith.constant 0 : index
    %c0_0 = arith.constant 0 : index
    %c0_1 = arith.constant 0 : index
    %0 = vector.load %arg2[%c0, %c0_0, %c0_1] : memref<1x128x128xf32, #tpu.memory_space<vmem>>, vector<1x128x128xf32>
    %1 = vector.shape_cast %0 : vector<1x128x128xf32> to vector<128x128xf32>
    %c0_2 = arith.constant 0 : index
    %c0_3 = arith.constant 0 : index
    %2 = vector.load %arg3[%c0_2, %c0_3] : memref<1x128xf32, #tpu.memory_space<vmem>>, vector<1x128xf32>
    %3 = vector.broadcast %2 : vector<1x128xf32> to vector<128x128xf32>
    %4 = arith.mulf %1, %3 : vector<128x128xf32>
    %c0_4 = arith.constant 0 : index
    %c0_5 = arith.constant 0 : index
    %5 = vector.load %arg4[%c0_4, %c0_5] : memref<1x128xf32, #tpu.memory_space<vmem>>, vector<1x128xf32>
    %6 = vector.broadcast %5 : vector<1x128xf32> to vector<128x128xf32>
    %7 = arith.addf %4, %6 : vector<128x128xf32>
    %cst = arith.constant 0.000000e+00 : f32
    %8 = vector.broadcast %cst : f32 to vector<128x128xf32>
    %9 = arith.cmpf ogt, %7, %8 : vector<128x128xf32>
    %cst_6 = arith.constant 0.000000e+00 : f32
    %10 = vector.broadcast %cst_6 : f32 to vector<128x128xf32>
    %11 = arith.mulf %10, %7 : vector<128x128xf32>
    %12 = arith.select %9, %7, %11 : vector<128x128xi1>, vector<128x128xf32>
    %c0_7 = arith.constant 0 : index
    %c0_8 = arith.constant 0 : index
    %c0_9 = arith.constant 0 : index
    %13 = vector.load %arg5[%c0_7, %c0_8, %c0_9] : memref<1x128x128xf32, #tpu.memory_space<vmem>>, vector<1x128x128xf32>
    %14 = vector.shape_cast %13 : vector<1x128x128xf32> to vector<128x128xf32>
    %15 = vector.shape_cast %12 : vector<128x128xf32> to vector<1x128x128xf32>
    tpu.vector_store %arg5[%c0_7, %c0_8, %c0_9], %15 {strides = array<i32>} : memref<1x128x128xf32, #tpu.memory_space<vmem>>, vector<1x128x128xf32>,
    return
  }
  func.func @transform_0(%arg0: i32, %arg1: i32) -> (i32, i32, i32) {
    %c0_i32 = arith.constant 0 : i32
    %c0_i32_0 = arith.constant 0 : i32
    return %arg0, %arg1, %c0_i32 : i32, i32, i32
  }
  func.func @transform_1(%arg0: i32, %arg1: i32) -> (i32, i32) {
    %c0_i32 = arith.constant 0 : i32
    %c0_i32_0 = arith.constant 0 : i32
    %c0_i32_1 = arith.constant 0 : i32
    return %c0_i32, %c0_i32_0 : i32, i32
  }
  func.func @transform_2(%arg0: i32, %arg1: i32) -> (i32, i32) {
    %c0_i32 = arith.constant 0 : i32
    %c0_i32_0 = arith.constant 0 : i32
    %c0_i32_1 = arith.constant 0 : i32
    return %c0_i32, %c0_i32_0 : i32, i32
  }
  func.func @transform_3(%arg0: i32, %arg1: i32) -> (i32, i32, i32) {
    %c0_i32 = arith.constant 0 : i32
    %c0_i32_0 = arith.constant 0 : i32
    return %arg0, %arg1, %c0_i32 : i32, i32, i32
  }
}

module attributes {stable_mosaic.version = 11 : i64} {
  func.func @_conv_stats_kernel(%arg0: i32, %arg1: i32, %arg2: memref<1x128x128xbf16, #tpu.memory_space<vmem>>, %arg3: memref<1x128x128xbf16, #tpu.memory_space<vmem>>, %arg4: memref<1x128x128xf32, #tpu.memory_space<vmem>>, %arg5: memref<1x1x1x128xf32, #tpu.memory_space<vmem>>, %arg6: memref<1x1x1x128xf32, #tpu.memory_space<vmem>>) attributes {dimension_semantics = [#tpu.dimension_semantics<parallel>, #tpu.dimension_semantics<parallel>], iteration_bounds = array<i64: 1, 1>, scalar_prefetch = 0 : i64, scratch_operands = 0 : i64, tpu.core_type = #tpu.core_type<tc>, window_params = [{transform_indices = @transform_0, window_bounds = array<i64: 1, 128, 128>}, {transform_indices = @transform_1, window_bounds = array<i64: 1, 128, 128>}, {transform_indices = @transform_2, window_bounds = array<i64: 1, 128, 128>}, {transform_indices = @transform_3, window_bounds = array<i64: 1, 1, 1, 128>}, {transform_indices = @transform_4, window_bounds = array<i64: 1, 1, 1, 128>}]} {
    %c0 = arith.constant 0 : index
    %c0_0 = arith.constant 0 : index
    %c0_1 = arith.constant 0 : index
    %0 = vector.load %arg2[%c0, %c0_0, %c0_1] : memref<1x128x128xbf16, #tpu.memory_space<vmem>>, vector<1x128x128xbf16>
    %1 = vector.shape_cast %0 : vector<1x128x128xbf16> to vector<128x128xbf16>
    %c0_2 = arith.constant 0 : index
    %c0_3 = arith.constant 0 : index
    %c0_4 = arith.constant 0 : index
    %2 = vector.load %arg3[%c0_2, %c0_3, %c0_4] : memref<1x128x128xbf16, #tpu.memory_space<vmem>>, vector<1x128x128xbf16>
    %3 = vector.shape_cast %2 : vector<1x128x128xbf16> to vector<128x128xbf16>
    %cst = arith.constant dense<0.000000e+00> : vector<128x128xf32>
    %4 = tpu.matmul %1, %3, %cst {dimension_numbers = #tpu.dot_dimension_numbers<[1], [0], [0], [1], [0, 0, 1, 1], [], []>} : vector<128x128xbf16>, vector<128x128xbf16>, vector<128x128xf32> -> vector<128x128xf32>
    %c0_5 = arith.constant 0 : index
    %c0_6 = arith.constant 0 : index
    %c0_7 = arith.constant 0 : index
    %5 = vector.load %arg4[%c0_5, %c0_6, %c0_7] : memref<1x128x128xf32, #tpu.memory_space<vmem>>, vector<1x128x128xf32>
    %6 = vector.shape_cast %5 : vector<1x128x128xf32> to vector<128x128xf32>
    %7 = vector.shape_cast %4 : vector<128x128xf32> to vector<1x128x128xf32>
    tpu.vector_store %arg4[%c0_5, %c0_6, %c0_7], %7 {strides = array<i32>} : memref<1x128x128xf32, #tpu.memory_space<vmem>>, vector<1x128x128xf32>,
    %cst_8 = arith.constant dense<0.000000e+00> : vector<128xf32>
    %8 = vector.multi_reduction <add>, %4, %cst_8 [0] : vector<128x128xf32> to vector<128xf32>
    %9 = vector.shape_cast %8 : vector<128xf32> to vector<1x128xf32>
    %c0_9 = arith.constant 0 : index
    %c0_10 = arith.constant 0 : index
    %c0_11 = arith.constant 0 : index
    %c0_12 = arith.constant 0 : index
    %10 = vector.load %arg5[%c0_9, %c0_10, %c0_11, %c0_12] : memref<1x1x1x128xf32, #tpu.memory_space<vmem>>, vector<1x1x1x128xf32>
    %11 = vector.shape_cast %10 : vector<1x1x1x128xf32> to vector<1x128xf32>
    %12 = vector.shape_cast %9 : vector<1x128xf32> to vector<1x1x1x128xf32>
    tpu.vector_store %arg5[%c0_9, %c0_10, %c0_11, %c0_12], %12 {strides = array<i32>} : memref<1x1x1x128xf32, #tpu.memory_space<vmem>>, vector<1x1x1x128xf32>,
    %13 = arith.mulf %4, %4 : vector<128x128xf32>
    %cst_13 = arith.constant dense<0.000000e+00> : vector<128xf32>
    %14 = vector.multi_reduction <add>, %13, %cst_13 [0] : vector<128x128xf32> to vector<128xf32>
    %15 = vector.shape_cast %14 : vector<128xf32> to vector<1x128xf32>
    %c0_14 = arith.constant 0 : index
    %c0_15 = arith.constant 0 : index
    %c0_16 = arith.constant 0 : index
    %c0_17 = arith.constant 0 : index
    %16 = vector.load %arg6[%c0_14, %c0_15, %c0_16, %c0_17] : memref<1x1x1x128xf32, #tpu.memory_space<vmem>>, vector<1x1x1x128xf32>
    %17 = vector.shape_cast %16 : vector<1x1x1x128xf32> to vector<1x128xf32>
    %18 = vector.shape_cast %15 : vector<1x128xf32> to vector<1x1x1x128xf32>
    tpu.vector_store %arg6[%c0_14, %c0_15, %c0_16, %c0_17], %18 {strides = array<i32>} : memref<1x1x1x128xf32, #tpu.memory_space<vmem>>, vector<1x1x1x128xf32>,
    return
  }
  func.func @transform_0(%arg0: i32, %arg1: i32) -> (i32, i32, i32) {
    %c0_i32 = arith.constant 0 : i32
    %c0_i32_0 = arith.constant 0 : i32
    return %arg0, %arg1, %c0_i32 : i32, i32, i32
  }
  func.func @transform_1(%arg0: i32, %arg1: i32) -> (i32, i32, i32) {
    %c0_i32 = arith.constant 0 : i32
    %c0_i32_0 = arith.constant 0 : i32
    %c0_i32_1 = arith.constant 0 : i32
    return %arg0, %c0_i32, %c0_i32_0 : i32, i32, i32
  }
  func.func @transform_2(%arg0: i32, %arg1: i32) -> (i32, i32, i32) {
    %c0_i32 = arith.constant 0 : i32
    %c0_i32_0 = arith.constant 0 : i32
    return %arg0, %arg1, %c0_i32 : i32, i32, i32
  }
  func.func @transform_3(%arg0: i32, %arg1: i32) -> (i32, i32, i32, i32) {
    %c0_i32 = arith.constant 0 : i32
    %c0_i32_0 = arith.constant 0 : i32
    %c0_i32_1 = arith.constant 0 : i32
    return %arg0, %arg1, %c0_i32, %c0_i32_0 : i32, i32, i32, i32
  }
  func.func @transform_4(%arg0: i32, %arg1: i32) -> (i32, i32, i32, i32) {
    %c0_i32 = arith.constant 0 : i32
    %c0_i32_0 = arith.constant 0 : i32
    %c0_i32_1 = arith.constant 0 : i32
    return %arg0, %arg1, %c0_i32, %c0_i32_0 : i32, i32, i32, i32
  }
}

</mosaic_0001>

<bundles_post_ra>
// kernel: block_forward.3
= control target key start
LH: loop header
LB: loop body
LE: loop exit
PB: predicated region body
PF: predicated region fallthrough
CT: control target
= control target key end

     0   :  { %s306_s0 = inlined_call_operand.vmem [shape: f32[1,128,128], index: 0, kind: input, shape index: {}]   ;;  %s307_s1 = inlined_call_operand.vmem [shape: f32[1,128], index: 1, kind: input, shape index: {}]   ;;  %s308_s2 = inlined_call_operand.vmem [shape: f32[1,128], index: 2, kind: input, shape index: {}]   ;;  %s309_s3 = inlined_call_operand.vmem [shape: f32[1,128,128], index: 3, kind: output, shape index: {}]  }
   0x1   :  { %v14_v0 = vld [vmem:[%s306_s0] sm:$0xff]  ;;  %v15_v4 = vld [vmem:[%s306_s0 + $0x8] sm:$0xff]  ;;  %v16_v5 = vld [vmem:[%s306_s0 + $0x10] sm:$0xff] }
   0x2   :  { %v172_v1 = vld [vmem:[%s307_s1] ss:$0 sm:$0xff]  ;;  %v17_v6 = vld [vmem:[%s306_s0 + $0x18] sm:$0xff]  ;;  %v19_v11 = vld [vmem:[%s306_s0 + $0x28] sm:$0xff] }
   0x3   :  { %v177_v2 = vld [vmem:[%s308_s2] ss:$0 sm:$0xff]  ;;  %v37_v3 = vmul.f32 %v172_v1, %v14_v0  ;;  %v38_v7 = vmul.f32 %v172_v1, %v15_v4  ;;  %v39_v8 = vmul.f32 %v172_v1, %v16_v5  ;;  %v40_v9 = vmul.f32 %v172_v1, %v17_v6  ;;  %v20_v12 = vld [vmem:[%s306_s0 + $0x30] sm:$0xff]  ;;  %v21_v17 = vld [vmem:[%s306_s0 + $0x38] sm:$0xff] }
   0x4   :  { %v18_v10 = vld [vmem:[%s306_s0 + $0x20] sm:$0xff]  ;;  %v42_v15 = vmul.f32 %v172_v1, %v19_v11  ;;  %v43_v16 = vmul.f32 %v172_v1, %v20_v12  ;;  %v44_v21 = vmul.f32 %v172_v1, %v21_v17  ;;  %v23_v30 = vld [vmem:[%s306_s0 + $0x48] sm:$0xff]  ;;  %v24_v31 = vld [vmem:[%s306_s0 + $0x50] sm:$0xff] }
   0x5   :  { %v60_v13 = vadd.f32 %v177_v2, %v37_v3  ;;  %v41_v14 = vmul.f32 %v172_v1, %v18_v10  ;;  %v61_v18 = vadd.f32 %v177_v2, %v38_v7  ;;  %v62_v19 = vadd.f32 %v177_v2, %v39_v8  ;;  %v22_v29 = vld [vmem:[%s306_s0 + $0x40] sm:$0xff]  ;;  %v25_v43 = vld [vmem:[%s306_s0 + $0x58] sm:$0xff]  ;;  %v27_v45 = vld [vmem:[%s306_s0 + $0x68] sm:$0xff] }
   0x6   :  { %v63_v20 = vadd.f32 %v177_v2, %v40_v9  ;;  %v65_v24 = vadd.f32 %v177_v2, %v42_v15  ;;  %v66_v37 = vadd.f32 %v177_v2, %v43_v16  ;;  %v67_v38 = vadd.f32 %v177_v2, %v44_v21  ;;  %v26_v44 = vld [vmem:[%s306_s0 + $0x60] sm:$0xff]  ;;  %v28_v56 = vld [vmem:[%s306_s0 + $0x70] sm:$0xff]  ;;  %v29_v4 = vld [vmem:[%s306_s0 + $0x78] sm:$0xff] }
   0x7   :  { %vm76_vm0 = vcmp.gt.f32.partialorder %v60_v13, 0.0  ;;  %v92_v22 = vmul.f32 0.0, %v60_v13  ;;  %v64_v23 = vadd.f32 %v177_v2, %v41_v14  ;;  %vm77_vm1 = vcmp.gt.f32.partialorder %v61_v18, 0.0 }
   0x8   :  { %v93_v25 = vmul.f32 0.0, %v61_v18  ;;  %vm78_vm2 = vcmp.gt.f32.partialorder %v62_v19, 0.0  ;;  %v94_v26 = vmul.f32 0.0, %v62_v19  ;;  %vm79_vm3 = vcmp.gt.f32.partialorder %v63_v20, 0.0 }
   0x9   :  { %v108_v27 = vsel %vm76_vm0, %v60_v13, %v92_v22  ;;  %v95_v28 = vmul.f32 0.0, %v63_v20  ;;  %vm80_vm4 = vcmp.gt.f32.partialorder %v64_v23, 0.0  ;;  %v96_v34 = vmul.f32 0.0, %v64_v23 }
   0xa   :  { %124 = vst [vmem:[%s309_s3] sm:$0xff] %v108_v27  ;;  %v109_v32 = vsel %vm77_vm1, %v61_v18, %v93_v25  ;;  %v110_v33 = vsel %vm78_vm2, %v62_v19, %v94_v26  ;;  %vm81_vm5 = vcmp.gt.f32.partialorder %v65_v24, 0.0  ;;  %v97_v36 = vmul.f32 0.0, %v65_v24 }
   0xb   :  { %125 = vst [vmem:[%s309_s3 + $0x8] sm:$0xff] %v109_v32  ;;  %126 = vst [vmem:[%s309_s3 + $0x10] sm:$0xff] %v110_v33  ;;  %v111_v35 = vsel %vm79_vm3, %v63_v20, %v95_v28  ;;  %v112_v39 = vsel %vm80_vm4, %v64_v23, %v96_v34  ;;  %v45_v40 = vmul.f32 %v172_v1, %v22_v29  ;;  %vm82_vm6 = vcmp.gt.f32.partialorder %v66_v37, 0.0 }
   0xc   :  { %127 = vst [vmem:[%s309_s3 + $0x18] sm:$0xff] %v111_v35  ;;  %v46_v41 = vmul.f32 %v172_v1, %v23_v30  ;;  %v47_v42 = vmul.f32 %v172_v1, %v24_v31  ;;  %128 = vst [vmem:[%s309_s3 + $0x20] sm:$0xff] %v112_v39  ;;  %v113_v46 = vsel %vm81_vm5, %v65_v24, %v97_v36  ;;  %v98_v47 = vmul.f32 0.0, %v66_v37 }
   0xd   :  { %vm83_vm7 = vcmp.gt.f32.partialorder %v67_v38, 0.0  ;;  %129 = vst [vmem:[%s309_s3 + $0x28] sm:$0xff] %v113_v46  ;;  %v99_v48 = vmul.f32 0.0, %v67_v38  ;;  %v68_v49 = vadd.f32 %v177_v2, %v45_v40  ;;  %v48_v53 = vmul.f32 %v172_v1, %v25_v43 }
   0xe   :  { %v69_v50 = vadd.f32 %v177_v2, %v46_v41  ;;  %v70_v51 = vadd.f32 %v177_v2, %v47_v42  ;;  %v114_v52 = vsel %vm82_vm6, %v66_v37, %v98_v47  ;;  %v49_v54 = vmul.f32 %v172_v1, %v26_v44 }
   0xf   :  { %v50_v55 = vmul.f32 %v172_v1, %v27_v45  ;;  %130 = vst [vmem:[%s309_s3 + $0x30] sm:$0xff] %v114_v52  ;;  %v115_v57 = vsel %vm83_vm7, %v67_v38, %v99_v48  ;;  %vm84_vm8 = vcmp.gt.f32.partialorder %v68_v49, 0.0  ;;  %v100_v58 = vmul.f32 0.0, %v68_v49 }
  0x10   :  { %vm85_vm9 = vcmp.gt.f32.partialorder %v69_v50, 0.0  ;;  %131 = vst [vmem:[%s309_s3 + $0x38] sm:$0xff] %v115_v57  ;;  %v101_v59 = vmul.f32 0.0, %v69_v50  ;;  %vm86_vm10 = vcmp.gt.f32.partialorder %v70_v51, 0.0  ;;  %v102_v60 = vmul.f32 0.0, %v70_v51 }
  0x11   :  { %v71_v61 = vadd.f32 %v177_v2, %v48_v53  ;;  %v116_v62 = vsel %vm84_vm8, %v68_v49, %v100_v58  ;;  %v72_v63 = vadd.f32 %v177_v2, %v49_v54  ;;  %v73_v0 = vadd.f32 %v177_v2, %v50_v55 }
  0x12   :  { %v51_v3 = vmul.f32 %v172_v1, %v28_v56  ;;  %132 = vst [vmem:[%s309_s3 + $0x40] sm:$0xff] %v116_v62  ;;  %v117_v5 = vsel %vm85_vm9, %v69_v50, %v101_v59  ;;  %v118_v6 = vsel %vm86_vm10, %v70_v51, %v102_v60  ;;  %v52_v12 = vmul.f32 %v172_v1, %v29_v4 }
  0x13   :  { %vm87_vm11 = vcmp.gt.f32.partialorder %v71_v61, 0.0  ;;  %v103_v7 = vmul.f32 0.0, %v71_v61  ;;  %133 = vst [vmem:[%s309_s3 + $0x48] sm:$0xff] %v117_v5  ;;  %134 = vst [vmem:[%s309_s3 + $0x50] sm:$0xff] %v118_v6  ;;  %vm88_vm12 = vcmp.gt.f32.partialorder %v72_v63, 0.0  ;;  %v104_v8 = vmul.f32 0.0, %v72_v63 }
  0x14   :  { %vm89_vm13 = vcmp.gt.f32.partialorder %v73_v0, 0.0  ;;  %v105_v9 = vmul.f32 0.0, %v73_v0  ;;  %v74_v11 = vadd.f32 %v177_v2, %v51_v3  ;;  %v75_v16 = vadd.f32 %v177_v2, %v52_v12 }
  0x15   :  { %v119_v10 = vsel %vm87_vm11, %v71_v61, %v103_v7  ;;  %v120_v13 = vsel %vm88_vm12, %v72_v63, %v104_v8 }
  0x16   :  { %135 = vst [vmem:[%s309_s3 + $0x58] sm:$0xff] %v119_v10  ;;  %v121_v14 = vsel %vm89_vm13, %v73_v0, %v105_v9  ;;  %136 = vst [vmem:[%s309_s3 + $0x60] sm:$0xff] %v120_v13  ;;  %vm90_vm14 = vcmp.gt.f32.partialorder %v74_v11, 0.0  ;;  %v106_v15 = vmul.f32 0.0, %v74_v11  ;;  %vm91_vm15 = vcmp.gt.f32.partialorder %v75_v16, 0.0 }
  0x17   :  { %137 = vst [vmem:[%s309_s3 + $0x68] sm:$0xff] %v121_v14  ;;  %v107_v1 = vmul.f32 0.0, %v75_v16 }
  0x18   :  { %v122_v17 = vsel %vm90_vm14, %v74_v11, %v106_v15 }
  0x19   :  { %138 = vst [vmem:[%s309_s3 + $0x70] sm:$0xff] %v122_v17  ;;  %v123_v18 = vsel %vm91_vm15, %v75_v16, %v107_v1 }
  0x1a   :  { %139 = vst [vmem:[%s309_s3 + $0x78] sm:$0xff] %v123_v18 }

// kernel: block_forward.2
= control target key start
LH: loop header
LB: loop body
LE: loop exit
PB: predicated region body
PF: predicated region fallthrough
CT: control target
= control target key end

     0   :  { %s551_s1 = inlined_call_operand.vmem [shape: bf16[1,128,128], index: 1, kind: input, shape index: {}]   ;;  %s552_s0 = inlined_call_operand.vmem [shape: bf16[1,128,128], index: 0, kind: input, shape index: {}]   ;;  %s553_s2 = inlined_call_operand.vmem [shape: f32[1,128,128], index: 2, kind: output, shape index: {0}]   ;;  %s554_s3 = inlined_call_operand.vmem [shape: f32[1,1,1,128], index: 3, kind: output, shape index: {1}]   ;;  %s555_s4 = inlined_call_operand.vmem [shape: f32[1,1,1,128], index: 4, kind: output, shape index: {2}]  }
   0x1   :  { %v408_v0 = vld [vmem:[%s551_s1] sm:$0xff]   ;;  %v409_v1 = vld [vmem:[%s551_s1 + $0x8] sm:$0xff]   ;;  %v410_v2 = vld [vmem:[%s551_s1 + $0x10] sm:$0xff]  }
   0x2   :  { %360 = vmatprep.subr.bf16.mxu0 %v408_v0  ;;  %392 = vmatprep.subr.bf16.mxu1 %v408_v0  ;;  %v411_v3 = vld [vmem:[%s551_s1 + $0x18] sm:$0xff]   ;;  %v416_v4 = vld [vmem:[%s552_s0] sm:$0xff]   ;;  %v413_v7 = vld [vmem:[%s551_s1 + $0x28] sm:$0xff]  }
   0x3   :  { %361 = vmatpush3.bf16.msra.mxu0 %v408_v0  ;;  %400 = vmatpush3.bf16.msra.mxu1 %v408_v0  ;;  %v412_v5 = vld [vmem:[%s551_s1 + $0x20] sm:$0xff]   ;;  %v414_v8 = vld [vmem:[%s551_s1 + $0x30] sm:$0xff]   ;;  %v415_v9 = vld [vmem:[%s551_s1 + $0x38] sm:$0xff]  }
   0x4   :  { %362 = vmatprep.subr.bf16.mxu0 %v409_v1  ;;  %393 = vmatprep.subr.bf16.mxu1 %v409_v1  ;;  %v420_v6 = vld [vmem:[%s552_s0 + $0x20] sm:$0xff]   ;;  %v417_v10 = vld [vmem:[%s552_s0 + $0x8] sm:$0xff]   ;;  %v418_v12 = vld [vmem:[%s552_s0 + $0x10] sm:$0xff]  }
   0x5   :  { %376 = vmatprep.mubr.bf16.mxu0 %v416_v4  ;;  %384 = vmatprep.mubr.bf16.mxu1 %v420_v6  ;;  %v421_v11 = vld [vmem:[%s552_s0 + $0x28] sm:$0xff]   ;;  %v422_v13 = vld [vmem:[%s552_s0 + $0x30] sm:$0xff]   ;;  %v419_v14 = vld [vmem:[%s552_s0 + $0x18] sm:$0xff]  }
   0x6   :  { %v423_v15 = vld [vmem:[%s552_s0 + $0x38] sm:$0xff]  }
   0x7   :  { %363 = vmatpush3.bf16.msra.mxu0 %v409_v1  ;;  %401 = vmatpush3.bf16.msra.mxu1 %v409_v1 }
   0x8   :  { %364 = vmatprep.subr.bf16.mxu0 %v410_v2  ;;  %394 = vmatprep.subr.bf16.mxu1 %v410_v2 }
   0xb   :  { %365 = vmatpush3.bf16.msra.mxu0 %v410_v2  ;;  %402 = vmatpush3.bf16.msra.mxu1 %v410_v2 }
   0xc   :  { %366 = vmatprep.subr.bf16.mxu0 %v411_v3  ;;  %395 = vmatprep.subr.bf16.mxu1 %v411_v3 }
   0xf   :  { %367 = vmatpush3.bf16.msra.mxu0 %v411_v3  ;;  %403 = vmatpush3.bf16.msra.mxu1 %v411_v3 }
  0x10   :  { %368 = vmatprep.subr.bf16.mxu0 %v412_v5  ;;  %396 = vmatprep.subr.bf16.mxu1 %v412_v5 }
  0x13   :  { %369 = vmatpush3.bf16.msra.mxu0 %v412_v5  ;;  %404 = vmatpush3.bf16.msra.mxu1 %v412_v5 }
  0x14   :  { %370 = vmatprep.subr.bf16.mxu0 %v413_v7  ;;  %397 = vmatprep.subr.bf16.mxu1 %v413_v7 }
  0x17   :  { %371 = vmatpush3.bf16.msra.mxu0 %v413_v7  ;;  %405 = vmatpush3.bf16.msra.mxu1 %v413_v7 }
  0x18   :  { %372 = vmatprep.subr.bf16.mxu0 %v414_v8  ;;  %398 = vmatprep.subr.bf16.mxu1 %v414_v8 }
  0x1b   :  { %373 = vmatpush3.bf16.msra.mxu0 %v414_v8  ;;  %406 = vmatpush3.bf16.msra.mxu1 %v414_v8 }
  0x1c   :  { %374 = vmatprep.subr.bf16.mxu0 %v415_v9  ;;  %399 = vmatprep.subr.bf16.mxu1 %v415_v9 }
  0x1f   :  { %375 = vmatpush3.bf16.msra.mxu0 %v415_v9  ;;  %407 = vmatpush3.bf16.msra.mxu1 %v415_v9 }
  0x22   :  { %377 = vmatmul.mubr.bf16.vlgmr.msra.gmra.mrb[0].mxu0 %v417_v10  ;;  %385 = vmatmul.mubr.bf16.vlgmr.msra.gmra.mrb[0].mxu1 %v421_v11 }
  0x23   :  { %380 = vmatprep.mubr.bf16.mxu0 %v418_v12  ;;  %388 = vmatprep.mubr.bf16.mxu1 %v422_v13 }
  0x2a   :  { %381 = vmatmul.mubr.bf16.gmra.mrb[4].mxu0 %v419_v14  ;;  %389 = vmatmul.mubr.bf16.gmra.mrb[4].mxu1 %v423_v15 }
  0xf5   :  { %v378_v16 = vpop.f32.mrb[0].mxu0  ;;  %v386_v17 = vpop.f32.mrb[0].mxu1 }
  0xf6   :  { %242 = vst [vmem:[%s553_s2 + $0x10] sm:$0xff] %v378_v16  ;;  %v177_v18 = vpop.f32.mrb[1].mxu0  ;;  %250 = vst [vmem:[%s553_s2 + $0x50] sm:$0xff] %v386_v17  ;;  %v209_v19 = vpop.f32.mrb[1].mxu1  ;;  %v280_v27 = vmul.f32 %v378_v16, %v378_v16  ;;  %v288_v59 = vmul.f32 %v386_v17, %v386_v17 }
  0xf7   :  { %240 = vst [vmem:[%s553_s2] sm:$0xff] %v177_v18  ;;  %v379_v20 = vpop.f32.mrb[2].mxu0  ;;  %248 = vst [vmem:[%s553_s2 + $0x40] sm:$0xff] %v209_v19  ;;  %v387_v21 = vpop.f32.mrb[2].mxu1  ;;  %v278_v24 = vmul.f32 %v177_v18, %v177_v18  ;;  %v286_v53 = vmul.f32 %v209_v19, %v209_v19 }
  0xf8   :  { %243 = vst [vmem:[%s553_s2 + $0x18] sm:$0xff] %v379_v20  ;;  %v180_v22 = vpop.f32.mrb[3].mxu0  ;;  %251 = vst [vmem:[%s553_s2 + $0x58] sm:$0xff] %v387_v21  ;;  %v212_v23 = vpop.f32.mrb[3].mxu1  ;;  %v281_v30 = vmul.f32 %v379_v20, %v379_v20  ;;  %v289_v62 = vmul.f32 %v387_v21, %v387_v21 }
  0xf9   :  { %241 = vst [vmem:[%s553_s2 + $0x8] sm:$0xff] %v180_v22  ;;  %v256_v25 = vadd.f32 %v180_v22, %v177_v18  ;;  %v279_v26 = vmul.f32 %v180_v22, %v180_v22  ;;  %249 = vst [vmem:[%s553_s2 + $0x48] sm:$0xff] %v212_v23  ;;  %v287_v58 = vmul.f32 %v212_v23, %v212_v23 }
  0xfb   :  { %v257_v28 = vadd.f32 %v378_v16, %v256_v25  ;;  %v294_v29 = vadd.f32 %v279_v26, %v278_v24 }
  0xfd   :  { %v295_v31 = vadd.f32 %v294_v29, %v280_v27  ;;  %v382_v32 = vpop.f32.mrb[4].mxu0  ;;  %v258_v33 = vadd.f32 %v379_v20, %v257_v28  ;;  %v390_v34 = vpop.f32.mrb[4].mxu1 }
  0xfe   :  { %246 = vst [vmem:[%s553_s2 + $0x30] sm:$0xff] %v382_v32  ;;  %v193_v35 = vpop.f32.mrb[5].mxu0  ;;  %254 = vst [vmem:[%s553_s2 + $0x70] sm:$0xff] %v390_v34  ;;  %v225_v36 = vpop.f32.mrb[5].mxu1  ;;  %v284_v47 = vmul.f32 %v382_v32, %v382_v32  ;;  %v292_v7 = vmul.f32 %v390_v34, %v390_v34 }
  0xff   :  { %244 = vst [vmem:[%s553_s2 + $0x20] sm:$0xff] %v193_v35  ;;  %v259_v37 = vadd.f32 %v258_v33, %v193_v35  ;;  %v282_v38 = vmul.f32 %v193_v35, %v193_v35  ;;  %v296_v39 = vadd.f32 %v295_v31, %v281_v30  ;;  %v383_v40 = vpop.f32.mrb[6].mxu0  ;;  %252 = vst [vmem:[%s553_s2 + $0x60] sm:$0xff] %v225_v36  ;;  %v391_v41 = vpop.f32.mrb[6].mxu1 }
 0x100   :  { %247 = vst [vmem:[%s553_s2 + $0x38] sm:$0xff] %v383_v40  ;;  %v196_v42 = vpop.f32.mrb[7].mxu0  ;;  %255 = vst [vmem:[%s553_s2 + $0x78] sm:$0xff] %v391_v41  ;;  %v228_v43 = vpop.f32.mrb[7].mxu1  ;;  %v285_v50 = vmul.f32 %v383_v40, %v383_v40  ;;  %v290_v1 = vmul.f32 %v225_v36, %v225_v36  ;;  %v293_v10 = vmul.f32 %v391_v41, %v391_v41 }
 0x101   :  { %v297_v44 = vadd.f32 %v296_v39, %v282_v38  ;;  %245 = vst [vmem:[%s553_s2 + $0x28] sm:$0xff] %v196_v42  ;;  %v260_v45 = vadd.f32 %v259_v37, %v196_v42  ;;  %v283_v46 = vmul.f32 %v196_v42, %v196_v42  ;;  %253 = vst [vmem:[%s553_s2 + $0x68] sm:$0xff] %v228_v43 }
 0x102   :  { %v291_v6 = vmul.f32 %v228_v43, %v228_v43 }
 0x103   :  { %v261_v48 = vadd.f32 %v382_v32, %v260_v45  ;;  %v298_v49 = vadd.f32 %v297_v44, %v283_v46 }
 0x105   :  { %v299_v51 = vadd.f32 %v298_v49, %v284_v47  ;;  %v262_v52 = vadd.f32 %v383_v40, %v261_v48 }
 0x107   :  { %v263_v54 = vadd.f32 %v262_v52, %v209_v19  ;;  %v300_v55 = vadd.f32 %v299_v51, %v285_v50 }
 0x109   :  { %v301_v56 = vadd.f32 %v300_v55, %v286_v53  ;;  %v264_v57 = vadd.f32 %v263_v54, %v212_v23 }
 0x10b   :  { %v265_v60 = vadd.f32 %v386_v17, %v264_v57  ;;  %v302_v61 = vadd.f32 %v301_v56, %v287_v58 }
 0x10d   :  { %v303_v63 = vadd.f32 %v302_v61, %v288_v59  ;;  %v266_v0 = vadd.f32 %v387_v21, %v265_v60 }
 0x10f   :  { %v267_v2 = vadd.f32 %v266_v0, %v225_v36  ;;  %v304_v3 = vadd.f32 %v303_v63, %v289_v62 }
 0x111   :  { %v305_v4 = vadd.f32 %v304_v3, %v290_v1  ;;  %v268_v5 = vadd.f32 %v267_v2, %v228_v43 }
 0x113   :  { %v269_v8 = vadd.f32 %v390_v34, %v268_v5  ;;  %v306_v9 = vadd.f32 %v305_v4, %v291_v6 }
 0x115   :  { %v270_v11 = vadd.f32 %v391_v41, %v269_v8  ;;  %v307_v12 = vadd.f32 %v306_v9, %v292_v7 }
 0x117   :  { %v271_v13 = vrot.slane %v270_v11, 4  ;;  %v308_v14 = vadd.f32 %v307_v12, %v293_v10 }
 0x119   :  { %v272_v15 = vadd.f32 %v271_v13, %v270_v11  ;;  %v309_v16 = vrot.slane %v308_v14, 4 }
 0x11b   :  { %v273_v17 = vrot.slane %v272_v15, 2  ;;  %v310_v18 = vadd.f32 %v309_v16, %v308_v14 }
 0x11d   :  { %v274_v19 = vadd.f32 %v273_v17, %v272_v15  ;;  %v311_v20 = vrot.slane %v310_v18, 2 }
 0x11f   :  { %v275_v21 = vrot.slane %v274_v19, 1  ;;  %v312_v22 = vadd.f32 %v311_v20, %v310_v18 }
 0x121   :  { %v276_v23 = vadd.f32 %v275_v21, %v274_v19  ;;  %v313_v24 = vrot.slane %v312_v22, 1 }
 0x123   :  { %277 = vst [vmem:[%s554_s3] sm:$0x1] %v276_v23  ;;  %v314_v25 = vadd.f32 %v313_v24, %v312_v22 }
 0x125   :  { %315 = vst [vmem:[%s555_s4] sm:$0x1] %v314_v25 }

</bundles_post_ra>
